<compile_context>
chip_gen: v7x
topology: tpu7x:2x2x1
jax: 0.10.0
libtpu: 0.0.40
codegen_flags: <defaults>
</compile_context>

<pallas_src>
import functools

import jax
import jax.numpy as jnp
from jax import lax
from jax.experimental import pallas as pl
from jax.experimental.pallas import tpu as pltpu

EPSILON = 1e-8  # matches the module-level EPSILON default used by cLN


def _round_up(n, m):
    return ((n + m - 1) // m) * m


def _cln_kernel(x_ref, gain_ref, bias_ref, o_ref, carry_ref, *,
                eps, n_channels, t_tile, seq_len):
    t = pl.program_id(1)

    # New batch element -> reset the running (cum_sum, cum_pow_sum) carry.
    @pl.when(t == 0)
    def _():
        carry_ref[...] = jnp.zeros_like(carry_ref)

    # ---- per-timestep channel reductions (first streaming read of x) ----
    x = x_ref[0].astype(jnp.float32)                       # (C, tT)
    step_sum = jnp.sum(x, axis=0, keepdims=True)           # (1, tT)
    step_pow = jnp.sum(x * x, axis=0, keepdims=True)       # (1, tT)

    lane = lax.broadcasted_iota(jnp.int32, (1, t_tile), 1)  # (1, tT)
    t_start = t * t_tile
    if seq_len % t_tile != 0:
        # Ragged last tile: Pallas edge-block input padding is unspecified, so
        # zero its contribution to the cumulative stats. Cheap (1, tT) selects
        # (masking after the channel reduction, not the (C, tT) tile itself).
        valid = (lane + t_start) < seq_len
        step_sum = jnp.where(valid, step_sum, 0.0)
        step_pow = jnp.where(valid, step_pow, 0.0)

    stats = jnp.concatenate([step_sum, step_pow], axis=0)   # (2, tT)

    # ---- inclusive prefix sum along lanes: Hillis-Steele roll + masked add
    # (XLU work, O(T log T), no (T, T) matrix, no MXU) ----
    col = lax.broadcasted_iota(jnp.int32, stats.shape, 1)
    shift = 1
    while shift < t_tile:
        rolled = pltpu.roll(stats, shift, axis=1)
        stats = stats + jnp.where(col >= shift, rolled, 0.0)
        shift *= 2

    cum = stats + carry_ref[...]                             # (2, tT) global cumsums
    # New carry = old carry + tile total = last column of the inclusive scan
    # (saves a separate cross-lane reduction).
    carry_ref[...] = cum[:, t_tile - 1:t_tile]

    cum_sum = cum[0:1, :]                                    # (1, tT)
    cum_pow = cum[1:2, :]                                    # (1, tT)

    # entry_cnt[t_global] = C * (t_global + 1); reciprocal on the EUP, (1, tT).
    cnt = (lane + (t_start + 1)).astype(jnp.float32) * jnp.float32(n_channels)
    inv_cnt = pl.reciprocal(cnt, approx=False)               # (1, tT)

    cum_mean = cum_sum * inv_cnt
    cum_var = (cum_pow - 2.0 * cum_mean * cum_sum) * inv_cnt + cum_mean * cum_mean
    inv_std = lax.rsqrt(jnp.maximum(cum_var, 0.0) + jnp.float32(eps))  # (1, tT), EUP

    gain = gain_ref[0].astype(jnp.float32)                   # (C, 1)
    bias = bias_ref[0].astype(jnp.float32)                   # (C, 1)

    # Second streaming read of x: avoids holding the f32 (C, tT) copy live
    # across the unrolled scan.  Output path is pure VPU mul/add.
    x2 = x_ref[0].astype(jnp.float32)
    o_ref[0] = ((x2 - cum_mean) * inv_std * gain + bias).astype(o_ref.dtype)


def cln_forward(x, gain, bias, eps=EPSILON, time_tile=None):
    """x: (B, C, T); gain, bias: (1, C, 1). Returns (B, C, T)."""
    B, C, T = x.shape
    itemsize = jnp.dtype(x.dtype).itemsize

    # ---- time-tile sizing with explicit VMEM budgeting ----
    if time_tile is None:
        # Aim for ~4 MiB per x block (memory-bound roofline saturates ~1 MiB+).
        t_tile = (4 * 1024 * 1024) // max(C * itemsize, 1)
    else:
        t_tile = int(time_tile)
    # Cap so double-buffered in+out (4 * block) stays <= ~24 MiB (v7x-safe).
    max_tile = (6 * 1024 * 1024) // max(C * itemsize, 1)
    t_tile = max(128, min(t_tile, max_tile, 32768))
    t_tile = (t_tile // 128) * 128                 # lane-dense multiple of 128
    t_tile = min(t_tile, _round_up(T, 128))        # never larger than sequence

    n_t = pl.cdiv(T, t_tile)

    block_bytes = C * t_tile * itemsize
    # double-buffered in + out blocks, plus one f32 (C, tT) temp and slack.
    vmem_needed = 4 * block_bytes + 2 * C * t_tile * 4 + (1 << 20)
    vmem_limit = int(min(56 * 1024 * 1024, max(32 * 1024 * 1024, vmem_needed)))

    kernel = functools.partial(_cln_kernel, eps=eps, n_channels=C,
                               t_tile=t_tile, seq_len=T)

    cost = pl.CostEstimate(
        flops=8 * B * C * T,
        transcendentals=2 * B * T,
        bytes_accessed=2 * B * C * T * itemsize + 2 * C * itemsize,
    )

    out = pl.pallas_call(
        kernel,
        out_shape=jax.ShapeDtypeStruct((B, C, T), x.dtype),
        grid_spec=pltpu.PrefetchScalarGridSpec(
            num_scalar_prefetch=0,
            grid=(B, n_t),
            in_specs=[
                pl.BlockSpec((1, C, t_tile), lambda b, t: (b, 0, t)),
                pl.BlockSpec((1, C, 1), lambda b, t: (0, 0, 0)),
                pl.BlockSpec((1, C, 1), lambda b, t: (0, 0, 0)),
            ],
            out_specs=pl.BlockSpec((1, C, t_tile), lambda b, t: (b, 0, t)),
            scratch_shapes=[pltpu.VMEM((2, 1), jnp.float32)],  # running cum_sum / cum_pow_sum
        ),
        compiler_params=pltpu.CompilerParams(
            dimension_semantics=("parallel", "arbitrary"),
            vmem_limit_bytes=vmem_limit),
        cost_estimate=cost,
    )(x, gain, bias)
    return out


def cln_reference(x, gain, bias, eps=EPSILON):
    """Pure-JAX reference mirroring the PyTorch forward."""
    B, C, T = x.shape
    step_sum = x.sum(axis=1)                       # (B, T)
    step_pow_sum = (x ** 2).sum(axis=1)            # (B, T)
    cum_sum = jnp.cumsum(step_sum, axis=1)
    cum_pow_sum = jnp.cumsum(step_pow_sum, axis=1)
    entry_cnt = jnp.arange(C, C * (T + 1), C, dtype=x.dtype)[None, :]  # (1, T)
    cum_mean = cum_sum / entry_cnt
    cum_var = (cum_pow_sum - 2 * cum_mean * cum_sum) / entry_cnt + cum_mean ** 2
    cum_std = jnp.sqrt(cum_var + eps)
    y = (x - cum_mean[:, None, :]) / cum_std[:, None, :]
    return y * gain + bias


if __name__ == "__main__":
    key = jax.random.PRNGKey(0)

    # dimension (channel) = 4, batch = 2, time = 16  -- small spec-consistent test
    B, C, T = 2, 4, 16
    x = jax.random.normal(key, (B, C, T), dtype=jnp.float32)
    gain = jnp.ones((1, C, 1), dtype=jnp.float32)   # nn.Parameter(torch.ones((1, C, 1)))
    bias = jnp.zeros((1, C, 1), dtype=jnp.float32)  # nn.Parameter(torch.zeros((1, C, 1)))

    out = jax.block_until_ready(cln_forward(x, gain, bias))
    ref = cln_reference(x, gain, bias)
    assert out.shape == (B, C, T)
    assert jnp.allclose(out, ref, atol=1e-5, rtol=1e-5), "mismatch vs reference (ragged single tile)"

    # Multi-tile with a ragged tail: exercises the cross-tile carry AND the
    # in-kernel tail masking (no host-side pad/slice anymore).
    T2 = 200
    x2 = jax.random.normal(jax.random.PRNGKey(1), (B, C, T2), dtype=jnp.float32)
    out2 = jax.block_until_ready(cln_forward(x2, gain, bias, time_tile=128))
    ref2 = cln_reference(x2, gain, bias)
    assert out2.shape == (B, C, T2)
    assert jnp.allclose(out2, ref2, atol=1e-5, rtol=1e-5), "mismatch vs reference (ragged multi tile)"

    # Multi-tile, exact multiple of the tile: mask-free fast path.
    T3 = 256
    x3 = jax.random.normal(jax.random.PRNGKey(2), (B, C, T3), dtype=jnp.float32)
    out3 = jax.block_until_ready(cln_forward(x3, gain, bias, time_tile=128))
    ref3 = cln_reference(x3, gain, bias)
    assert out3.shape == (B, C, T3)
    assert jnp.allclose(out3, ref3, atol=1e-5, rtol=1e-5), "mismatch vs reference (aligned multi tile)"

    print("KERNEL_OK")
</pallas_src>

<mosaic_0001>
module attributes {stable_mosaic.version = 11 : i64} {
  func.func @_cln_kernel(%arg0: i32, %arg1: i32, %arg2: memref<1x4x128xf32, #tpu.memory_space<vmem>>, %arg3: memref<1x4x1xf32, #tpu.memory_space<vmem>>, %arg4: memref<1x4x1xf32, #tpu.memory_space<vmem>>, %arg5: memref<1x4x128xf32, #tpu.memory_space<vmem>>, %arg6: memref<2x1xf32, #tpu.memory_space<vmem>>) attributes {dimension_semantics = [#tpu.dimension_semantics<parallel>, #tpu.dimension_semantics<arbitrary>], iteration_bounds = array<i64: 2, 1>, scalar_prefetch = 0 : i64, scratch_operands = 1 : i64, tpu.core_type = #tpu.core_type<tc>, window_params = [{transform_indices = @transform_0, window_bounds = array<i64: 1, 4, 128>}, {pipeline_mode = #tpu.pipeline_mode<synchronous>, transform_indices = @transform_1, window_bounds = array<i64: 1, 4, 1>}, {pipeline_mode = #tpu.pipeline_mode<synchronous>, transform_indices = @transform_2, window_bounds = array<i64: 1, 4, 1>}, {transform_indices = @transform_3, window_bounds = array<i64: 1, 4, 128>}]} {
    %c0_i32 = arith.constant 0 : i32
    %0 = arith.cmpi eq, %arg1, %c0_i32 : i32
    %1 = arith.extui %0 : i1 to i32
    %c0_i32_0 = arith.constant 0 : i32
    %2 = arith.cmpi ne, %1, %c0_i32_0 : i32
    scf.if %2 {
      %cst_42 = arith.constant 0.000000e+00 : f32
      %108 = vector.broadcast %cst_42 : f32 to vector<2x1xf32>
      %c0_43 = arith.constant 0 : index
      %c0_44 = arith.constant 0 : index
      %109 = vector.load %arg6[%c0_43, %c0_44] : memref<2x1xf32, #tpu.memory_space<vmem>>, vector<2x1xf32>
      tpu.vector_store %arg6[%c0_43, %c0_44], %108 {strides = array<i32>} : memref<2x1xf32, #tpu.memory_space<vmem>>, vector<2x1xf32>,
    } else {
    }
    %c0 = arith.constant 0 : index
    %c0_1 = arith.constant 0 : index
    %c0_2 = arith.constant 0 : index
    %3 = vector.load %arg2[%c0, %c0_1, %c0_2] : memref<1x4x128xf32, #tpu.memory_space<vmem>>, vector<1x4x128xf32>
    %4 = vector.shape_cast %3 : vector<1x4x128xf32> to vector<4x128xf32>
    %cst = arith.constant dense<0.000000e+00> : vector<128xf32>
    %5 = vector.multi_reduction <add>, %4, %cst [0] : vector<4x128xf32> to vector<128xf32>
    %6 = vector.shape_cast %5 : vector<128xf32> to vector<1x128xf32>
    %7 = arith.mulf %4, %4 : vector<4x128xf32>
    %cst_3 = arith.constant dense<0.000000e+00> : vector<128xf32>
    %8 = vector.multi_reduction <add>, %7, %cst_3 [0] : vector<4x128xf32> to vector<128xf32>
    %9 = vector.shape_cast %8 : vector<128xf32> to vector<1x128xf32>
    %10 = tpu.iota {dimensions = array<i32: 1>} : vector<1x128xi32>
    %c128_i32 = arith.constant 128 : i32
    %11 = arith.muli %arg1, %c128_i32 : i32
    %12 = vector.broadcast %11 : i32 to vector<1x128xi32>
    %13 = arith.addi %10, %12 : vector<1x128xi32>
    %c16_i32 = arith.constant 16 : i32
    %14 = vector.broadcast %c16_i32 : i32 to vector<1x128xi32>
    %15 = arith.cmpi slt, %13, %14 : vector<1x128xi32>
    %cst_4 = arith.constant 0.000000e+00 : f32
    %16 = vector.broadcast %cst_4 : f32 to vector<1x128xf32>
    %17 = arith.select %15, %6, %16 : vector<1x128xi1>, vector<1x128xf32>
    %cst_5 = arith.constant 0.000000e+00 : f32
    %18 = vector.broadcast %cst_5 : f32 to vector<1x128xf32>
    %19 = arith.select %15, %9, %18 : vector<1x128xi1>, vector<1x128xf32>
    %20 = tpu.concatenate %17, %19 in 0 : vector<1x128xf32>, vector<1x128xf32> -> vector<2x128xf32>
    %21 = tpu.iota {dimensions = array<i32: 1>} : vector<2x128xi32>
    %c1_i32 = arith.constant 1 : i32
    %22 = tpu.dynamic_rotate %20 by %c1_i32 dim 1 : vector<2x128xf32>, i32 -> vector<2x128xf32>
    %c1_i32_6 = arith.constant 1 : i32
    %23 = vector.broadcast %c1_i32_6 : i32 to vector<2x128xi32>
    %24 = arith.cmpi sge, %21, %23 : vector<2x128xi32>
    %cst_7 = arith.constant 0.000000e+00 : f32
    %25 = vector.broadcast %cst_7 : f32 to vector<2x128xf32>
    %26 = arith.select %24, %22, %25 : vector<2x128xi1>, vector<2x128xf32>
    %27 = arith.addf %20, %26 : vector<2x128xf32>
    %c2_i32 = arith.constant 2 : i32
    %28 = tpu.dynamic_rotate %27 by %c2_i32 dim 1 : vector<2x128xf32>, i32 -> vector<2x128xf32>
    %c2_i32_8 = arith.constant 2 : i32
    %29 = vector.broadcast %c2_i32_8 : i32 to vector<2x128xi32>
    %30 = arith.cmpi sge, %21, %29 : vector<2x128xi32>
    %cst_9 = arith.constant 0.000000e+00 : f32
    %31 = vector.broadcast %cst_9 : f32 to vector<2x128xf32>
    %32 = arith.select %30, %28, %31 : vector<2x128xi1>, vector<2x128xf32>
    %33 = arith.addf %27, %32 : vector<2x128xf32>
    %c4_i32 = arith.constant 4 : i32
    %34 = tpu.dynamic_rotate %33 by %c4_i32 dim 1 : vector<2x128xf32>, i32 -> vector<2x128xf32>
    %c4_i32_10 = arith.constant 4 : i32
    %35 = vector.broadcast %c4_i32_10 : i32 to vector<2x128xi32>
    %36 = arith.cmpi sge, %21, %35 : vector<2x128xi32>
    %cst_11 = arith.constant 0.000000e+00 : f32
    %37 = vector.broadcast %cst_11 : f32 to vector<2x128xf32>
    %38 = arith.select %36, %34, %37 : vector<2x128xi1>, vector<2x128xf32>
    %39 = arith.addf %33, %38 : vector<2x128xf32>
    %c8_i32 = arith.constant 8 : i32
    %40 = tpu.dynamic_rotate %39 by %c8_i32 dim 1 : vector<2x128xf32>, i32 -> vector<2x128xf32>
    %c8_i32_12 = arith.constant 8 : i32
    %41 = vector.broadcast %c8_i32_12 : i32 to vector<2x128xi32>
    %42 = arith.cmpi sge, %21, %41 : vector<2x128xi32>
    %cst_13 = arith.constant 0.000000e+00 : f32
    %43 = vector.broadcast %cst_13 : f32 to vector<2x128xf32>
    %44 = arith.select %42, %40, %43 : vector<2x128xi1>, vector<2x128xf32>
    %45 = arith.addf %39, %44 : vector<2x128xf32>
    %c16_i32_14 = arith.constant 16 : i32
    %46 = tpu.dynamic_rotate %45 by %c16_i32_14 dim 1 : vector<2x128xf32>, i32 -> vector<2x128xf32>
    %c16_i32_15 = arith.constant 16 : i32
    %47 = vector.broadcast %c16_i32_15 : i32 to vector<2x128xi32>
    %48 = arith.cmpi sge, %21, %47 : vector<2x128xi32>
    %cst_16 = arith.constant 0.000000e+00 : f32
    %49 = vector.broadcast %cst_16 : f32 to vector<2x128xf32>
    %50 = arith.select %48, %46, %49 : vector<2x128xi1>, vector<2x128xf32>
    %51 = arith.addf %45, %50 : vector<2x128xf32>
    %c32_i32 = arith.constant 32 : i32
    %52 = tpu.dynamic_rotate %51 by %c32_i32 dim 1 : vector<2x128xf32>, i32 -> vector<2x128xf32>
    %c32_i32_17 = arith.constant 32 : i32
    %53 = vector.broadcast %c32_i32_17 : i32 to vector<2x128xi32>
    %54 = arith.cmpi sge, %21, %53 : vector<2x128xi32>
    %cst_18 = arith.constant 0.000000e+00 : f32
    %55 = vector.broadcast %cst_18 : f32 to vector<2x128xf32>
    %56 = arith.select %54, %52, %55 : vector<2x128xi1>, vector<2x128xf32>
    %57 = arith.addf %51, %56 : vector<2x128xf32>
    %c64_i32 = arith.constant 64 : i32
    %58 = tpu.dynamic_rotate %57 by %c64_i32 dim 1 : vector<2x128xf32>, i32 -> vector<2x128xf32>
    %c64_i32_19 = arith.constant 64 : i32
    %59 = vector.broadcast %c64_i32_19 : i32 to vector<2x128xi32>
    %60 = arith.cmpi sge, %21, %59 : vector<2x128xi32>
    %cst_20 = arith.constant 0.000000e+00 : f32
    %61 = vector.broadcast %cst_20 : f32 to vector<2x128xf32>
    %62 = arith.select %60, %58, %61 : vector<2x128xi1>, vector<2x128xf32>
    %63 = arith.addf %57, %62 : vector<2x128xf32>
    %c0_21 = arith.constant 0 : index
    %c0_22 = arith.constant 0 : index
    %64 = vector.load %arg6[%c0_21, %c0_22] : memref<2x1xf32, #tpu.memory_space<vmem>>, vector<2x1xf32>
    %65 = vector.broadcast %64 : vector<2x1xf32> to vector<2x128xf32>
    %66 = arith.addf %63, %65 : vector<2x128xf32>
    %67 = vector.extract_strided_slice %66 {offsets = [0, 127], sizes = [2, 1], strides = [1, 1]} : vector<2x128xf32> to vector<2x1xf32>
    %c0_23 = arith.constant 0 : index
    %c0_24 = arith.constant 0 : index
    %68 = vector.load %arg6[%c0_23, %c0_24] : memref<2x1xf32, #tpu.memory_space<vmem>>, vector<2x1xf32>
    tpu.vector_store %arg6[%c0_23, %c0_24], %67 {strides = array<i32>} : memref<2x1xf32, #tpu.memory_space<vmem>>, vector<2x1xf32>,
    %69 = vector.extract_strided_slice %66 {offsets = [0, 0], sizes = [1, 128], strides = [1, 1]} : vector<2x128xf32> to vector<1x128xf32>
    %70 = vector.extract_strided_slice %66 {offsets = [1, 0], sizes = [1, 128], strides = [1, 1]} : vector<2x128xf32> to vector<1x128xf32>
    %c1_i32_25 = arith.constant 1 : i32
    %71 = arith.addi %11, %c1_i32_25 : i32
    %72 = vector.broadcast %71 : i32 to vector<1x128xi32>
    %73 = arith.addi %10, %72 : vector<1x128xi32>
    %74 = arith.sitofp %73 : vector<1x128xi32> to vector<1x128xf32>
    %cst_26 = arith.constant 4.000000e+00 : f32
    %75 = vector.broadcast %cst_26 : f32 to vector<1x128xf32>
    %76 = arith.mulf %74, %75 : vector<1x128xf32>
    %77 = tpu.reciprocal %76 : vector<1x128xf32> -> vector<1x128xf32>
    %78 = arith.mulf %69, %77 : vector<1x128xf32>
    %cst_27 = arith.constant 2.000000e+00 : f32
    %79 = vector.broadcast %cst_27 : f32 to vector<1x128xf32>
    %80 = arith.mulf %79, %78 : vector<1x128xf32>
    %81 = arith.mulf %80, %69 : vector<1x128xf32>
    %82 = arith.subf %70, %81 : vector<1x128xf32>
    %83 = arith.mulf %82, %77 : vector<1x128xf32>
    %84 = arith.mulf %78, %78 : vector<1x128xf32>
    %85 = arith.addf %83, %84 : vector<1x128xf32>
    %cst_28 = arith.constant 0.000000e+00 : f32
    %86 = vector.broadcast %cst_28 : f32 to vector<1x128xf32>
    %87 = arith.maximumf %85, %86 : vector<1x128xf32>
    %cst_29 = arith.constant 9.99999993E-9 : f32
    %88 = vector.broadcast %cst_29 : f32 to vector<1x128xf32>
    %89 = arith.addf %87, %88 : vector<1x128xf32>
    %90 = math.rsqrt %89 : vector<1x128xf32>
    %c0_30 = arith.constant 0 : index
    %c0_31 = arith.constant 0 : index
    %c0_32 = arith.constant 0 : index
    %91 = vector.load %arg3[%c0_30, %c0_31, %c0_32] : memref<1x4x1xf32, #tpu.memory_space<vmem>>, vector<1x4x1xf32>
    %92 = vector.shape_cast %91 : vector<1x4x1xf32> to vector<4x1xf32>
    %c0_33 = arith.constant 0 : index
    %c0_34 = arith.constant 0 : index
    %c0_35 = arith.constant 0 : index
    %93 = vector.load %arg4[%c0_33, %c0_34, %c0_35] : memref<1x4x1xf32, #tpu.memory_space<vmem>>, vector<1x4x1xf32>
    %94 = vector.shape_cast %93 : vector<1x4x1xf32> to vector<4x1xf32>
    %c0_36 = arith.constant 0 : index
    %c0_37 = arith.constant 0 : index
    %c0_38 = arith.constant 0 : index
    %95 = vector.load %arg2[%c0_36, %c0_37, %c0_38] : memref<1x4x128xf32, #tpu.memory_space<vmem>>, vector<1x4x128xf32>
    %96 = vector.shape_cast %95 : vector<1x4x128xf32> to vector<4x128xf32>
    %97 = vector.broadcast %78 : vector<1x128xf32> to vector<4x128xf32>
    %98 = arith.subf %96, %97 : vector<4x128xf32>
    %99 = vector.broadcast %90 : vector<1x128xf32> to vector<4x128xf32>
    %100 = arith.mulf %98, %99 : vector<4x128xf32>
    %101 = vector.broadcast %92 : vector<4x1xf32> to vector<4x128xf32>
    %102 = arith.mulf %100, %101 : vector<4x128xf32>
    %103 = vector.broadcast %94 : vector<4x1xf32> to vector<4x128xf32>
    %104 = arith.addf %102, %103 : vector<4x128xf32>
    %c0_39 = arith.constant 0 : index
    %c0_40 = arith.constant 0 : index
    %c0_41 = arith.constant 0 : index
    %105 = vector.load %arg5[%c0_39, %c0_40, %c0_41] : memref<1x4x128xf32, #tpu.memory_space<vmem>>, vector<1x4x128xf32>
    %106 = vector.shape_cast %105 : vector<1x4x128xf32> to vector<4x128xf32>
    %107 = vector.shape_cast %104 : vector<4x128xf32> to vector<1x4x128xf32>
    tpu.vector_store %arg5[%c0_39, %c0_40, %c0_41], %107 {strides = array<i32>} : memref<1x4x128xf32, #tpu.memory_space<vmem>>, vector<1x4x128xf32>,
    return
  }
  func.func @transform_0(%arg0: i32, %arg1: i32) -> (i32, i32, i32) {
    %c0_i32 = arith.constant 0 : i32
    %c0_i32_0 = arith.constant 0 : i32
    return %arg0, %c0_i32, %arg1 : i32, i32, i32
  }
  func.func @transform_1(%arg0: i32, %arg1: i32) -> (i32, i32, i32) {
    %c0_i32 = arith.constant 0 : i32
    %c0_i32_0 = arith.constant 0 : i32
    %c0_i32_1 = arith.constant 0 : i32
    %c0_i32_2 = arith.constant 0 : i32
    return %c0_i32, %c0_i32_0, %c0_i32_1 : i32, i32, i32
  }
  func.func @transform_2(%arg0: i32, %arg1: i32) -> (i32, i32, i32) {
    %c0_i32 = arith.constant 0 : i32
    %c0_i32_0 = arith.constant 0 : i32
    %c0_i32_1 = arith.constant 0 : i32
    %c0_i32_2 = arith.constant 0 : i32
    return %c0_i32, %c0_i32_0, %c0_i32_1 : i32, i32, i32
  }
  func.func @transform_3(%arg0: i32, %arg1: i32) -> (i32, i32, i32) {
    %c0_i32 = arith.constant 0 : i32
    %c0_i32_0 = arith.constant 0 : i32
    return %arg0, %c0_i32, %arg1 : i32, i32, i32
  }
}

</mosaic_0001>

<bundles_post_ra>
// kernel: tpu_custom_call.1
= control target key start
LH: loop header
LB: loop body
LE: loop exit
PB: predicated region body
PF: predicated region fallthrough
CT: control target
= control target key end

     0   :  { %8 = vsyncpa [#allocation4], 0  ;;  %s736_s0 = inlined_call_operand.vmem [shape: f32[2,4,16], index: 0, kind: input, shape index: {}]   ;;  %s737_s1 = inlined_call_operand.vmem [shape: f32[1,4,1], index: 1, kind: input, shape index: {}]   ;;  %s738_s2 = inlined_call_operand.vmem [shape: f32[1,4,1], index: 2, kind: input, shape index: {}]   ;;  %s739_s3 = inlined_call_operand.hbm [shape: f32[2,4,16], index: 3, kind: output, shape index: {}]  }
   0x1   :  { %10 = vsyncpa [#allocation4 + $0x1], 0  ;;  %s597_s12 = smov 0   ;;  %s599_s13 = smov 0  }
   0x2   :  { %s601_s14 = smov 0   ;;  %s603_s15 = smov 0  }
   0x3   :  { %s605_s16 = smov 0   ;;  %s607_s17 = smov 0  }
   0x4 LB: > { %s406_s18 = sadd.s32 4294967295, %s565_s17   ;;  %s407_s19 = sadd.s32 4294967294, %s565_s17   ;;  %s565_s17 = sphi %s607_s17, %s16_s17   ;;  %s561_s16 = sphi %s605_s16, %s746_s16   ;;  %s557_s15 = sphi %s603_s15, %s745_s15   ;;  %s553_s14 = sphi %s601_s14, %s744_s14   ;;  %s549_s13 = sphi %s599_s13, %s743_s13   ;;  %s545_s12 = sphi %s597_s12, %s742_s12  }
   0x5   : > { %s28_s20 = sadd.s32 1, %s561_s16  ;;  %s107_s21 = sadd.s32 1, %s553_s14 }
   0x6   : > { %p30_p0 = scmp.ge.s32.totalorder %s28_s20, 2  ;;  %p117_p1 = scmp.ne.s32.totalorder %s553_s14, %s549_s13 }
   0x7   : > { %p118_p2 = scmp.eq.s32.totalorder %s406_s18, 1  ;;  %p123_p3 = scmp.ne.s32.totalorder %s549_s13, %s545_s12 }
   0x8   : > { %s748_s20 = smov (%p30_p0, %s28_s20), 0  ;;  %p124_p5 = scmp.eq.s32.totalorder %s407_s19, 1 }
   0x9   : > { %p637_p4 = por %p118_p2, %p117_p1  ;;  %s102_s23 = ssub.s32 %s561_s16, %s748_s20 }
   0xa   : > { %p410_p6 = scmp.ge.s32.totalorder %s565_s17, 1  ;;  %p105_p7 = scmp.eq.s32.totalorder %s102_s23, 0 }
   0xb   : > { %p644_p8 = por %p124_p5, %p123_p3  ;;  %p158_p9 = scmp.lt.s32.totalorder %s565_s17, 3 }
   0xc   : > { %s650_s25 = scalar_select %p105_p7, %s553_s14, %s107_s21  }
   0xd   : > { %p159_p10 = pnand %p410_p6, %p158_p9 }
   0xe   : > { %p184_p11 = scmp.lt.s32.totalorder (!%p159_p10), %s557_s15, 1  ;;  %vm198_vm0 = vcmask (!%p159_p10), 1043456   ;;  %v214_v5 = vlaneseq (!%p159_p10)  ;;  %vm222_vm2 = vcmask (!%p159_p10), 1040384   ;;  %s567_s4 = smov (!%p159_p10), 1   ;;  %vm195_vm6 = vcmask (!%p159_p10), 1024  }
   0xf   : > { %162 = sbr.rel (%p159_p10) target bundleno = 988 (0x3dc), region = 32  ;;  %s568_s5 = smov (!%p159_p10), 2   ;;  %v571_v30 = vmov (!%p159_p10), 0   ;;  %v572_v31 = vmov (!%p159_p10), 0.0   ;;  %v295_v36 = vld [vmem:[%s738_s2] sm:$0xf] (!%p159_p10) }
  0x10   : > { %v661_v10 = vand.u32 (!%p159_p10), 127, %v214_v5  ;;  %s569_s6 = smov (!%p159_p10), 4   ;;  %s570_s7 = smov (!%p159_p10), 8   ;;  %481 = vset.pattern.permute.xlu0 (!%p159_p10), %v571_v30  ;;  %196 = vst.msk [vmem:[#allocation2] sm:$0x3] (!%p159_p10), %vm195_vm6, %v572_v31  ;;  %482 = vset.pattern.permute.xlu1 (!%p159_p10), %v571_v30 }
  0x11   : > { %s573_s8 = smov (!%p159_p10), 16   ;;  %s574_s11 = smov (!%p159_p10), 32   ;;  %v294_v43 = vld [vmem:[%s737_s1] sm:$0xf] (!%p159_p10) }
  0x12   : > { %vm219_vm1 = vcmp.lt.s32.totalorder (!%p159_p10), %v661_v10, 16  ;;  %vm226_vm3 = vcmp.ge.s32.totalorder (!%p159_p10), %v661_v10, 1  ;;  %vm231_vm4 = vcmp.ge.s32.totalorder (!%p159_p10), %v661_v10, 2  ;;  %vm236_vm5 = vcmp.ge.s32.totalorder (!%p159_p10), %v661_v10, 4  ;;  %s575_s18 = smov (!%p159_p10), 64   ;;  %s181_s23 = sand.u32 (!%p159_p10), 1, %s549_s13  }
  0x13   : > { %vm241_vm7 = vcmp.ge.s32.totalorder (!%p159_p10), %v661_v10, 8  ;;  %vm246_vm8 = vcmp.ge.s32.totalorder (!%p159_p10), %v661_v10, 16  ;;  %vm251_vm9 = vcmp.ge.s32.totalorder (!%p159_p10), %v661_v10, 32  ;;  %v274_v44 = vadd.s32 (!%p159_p10), 1, %v661_v10 }
  0x14   : > { %vm256_vm10 = vcmp.ge.s32.totalorder (!%p159_p10), %v661_v10, 64 }
  0x15   : > { %v275_v45 = vcvt.s32.f32 (!%p159_p10), %v274_v44 }
  0x16   : > { %s185_s26 = scalar_select %p184_p11, %s557_s15, 1 }
  0x17   : > { %v259_v35 = vld [vmem:[#allocation2] sm:$0x3]  ;;  %v276_v46 = vmul.f32 4.0, %v275_v45 }
  0x18   : > { %s412_s27 = sshll.u32 %s185_s26, 2  ;;  %s411_s26 = sshll.u32 %s181_s23, 2 }
  0x19   : > { %s657_s30 = scalar_lea.vmem %s736_s0, %s412_s27  ;;  %483 = vrcp.f32 %v276_v46  ;;  %s414_s27 = sshll.u32 %s557_s15, 6 }
  0x1a   : > { %v197_v0 = vld [vmem:[%s657_s30] sm:$0xf]  ;;  %s183_s28 = scalar_lea.vmem [#allocation3], %s411_s26  ;;  %s576_s15 = smov [#allocation3]  }
  0x1b   : > { %v199_v1 = vsel %vm198_vm0, %v197_v0, 0.0  ;;  %v206_v2 = vmul.f32 %v197_v0, %v197_v0  ;;  %v298_v0 = vshrl.u32 %v214_v5, 7  ;;  %s335_s29 = sshll.u32 %s183_s28, 4  ;;  %s690_s29 = int_to_ptr.vmem [resolvable:$true] %s335_s29 }
  0x1c   : > { %v200_v3 = vrot.slane %v199_v1, 4 }
  0x1d   : > { %v207_v4 = vsel %vm198_vm0, %v206_v2, 0.0  ;;  %v304_v2 = vsub.s32 1, %v298_v0 }
  0x1e   : > { %v201_v6 = vadd.f32 %v200_v3, %v199_v1  ;;  %v208_v7 = vrot.slane %v207_v4, 4  ;;  %v299_v1 = vsub.s32 0, %v298_v0 }
  0x20   : > { %v202_v8 = vrot.slane %v201_v6, 2  ;;  %v209_v9 = vadd.f32 %v208_v7, %v207_v4  ;;  %v296_v4 = vld [vmem:[%s657_s30] sm:$0xf]  ;;  %s321_s30 = scalar_lea.sflag [#allocation4], %s181_s23 }
  0x22   : > { %v203_v11 = vadd.f32 %v202_v8, %v201_v6  ;;  %v210_v12 = vrot.slane %v209_v9, 2 }
  0x23   : > { %v484_v50 = vpop.eup %483 }
  0x24   : > { %v204_v13 = vrot.slane %v203_v11, 1  ;;  %v211_v14 = vadd.f32 %v210_v12, %v209_v9 }
  0x26   : > { %v205_v15 = vadd.f32 %v204_v13, %v203_v11  ;;  %v212_v16 = vrot.slane %v211_v14, 1 }
  0x28   : > { %v213_v17 = vadd.f32 %v212_v16, %v211_v14  ;;  %v220_v18 = vsel %vm219_vm1, %v205_v15, 0.0 }
  0x2a   : > { %v221_v19 = vsel %vm219_vm1, %v213_v17, 0.0 }
  0x2b   : > { %v223_v20 = vsel %vm222_vm2, %v220_v18, %v221_v19 }
  0x2c   : > { %224 = vrot.lane.b32.xlu0 %v223_v20, %s567_s4 }
  0x9e   : > { %v225_v21 = vpop.permute.xlu0 %224 }
  0x9f   : > { %v227_v22 = vsel %vm226_vm3, %v225_v21, 0.0 }
  0xa0   : > { %v228_v23 = vadd.f32 %v227_v22, %v223_v20 }
  0xa2   : > { %229 = vrot.lane.b32.xlu0 %v228_v23, %s568_s5 }
 0x114   : > { %v230_v24 = vpop.permute.xlu0 %229 }
 0x115   : > { %v232_v25 = vsel %vm231_vm4, %v230_v24, 0.0 }
 0x116   : > { %v233_v26 = vadd.f32 %v232_v25, %v228_v23 }
 0x118   : > { %234 = vrot.lane.b32.xlu1 %v233_v26, %s569_s6  ;;  %s688_s6 = scalar_lea.hbm %s739_s3, %s414_s27 }
 0x18a   : > { %v235_v27 = vpop.permute.xlu1 %234 }
 0x18b   : > { %v237_v28 = vsel %vm236_vm5, %v235_v27, 0.0 }
 0x18c   : > { %v238_v29 = vadd.f32 %v237_v28, %v233_v26 }
 0x18e   : > { %239 = vrot.lane.b32.xlu1 %v238_v29, %s570_s7  ;;  %s487_s7 = scalar_lea.vmem %s690_s29, 64 }
 0x18f   : > { %p488_p12 = scmp.ne.s32.totalorder %s690_s29, %s487_s7 }
 0x191   : > { %p489_p13 = pnand %p488_p12, %p637_p4 }
 0x193   : > { %p490_p0 = pneg %p489_p13 }
 0x200   : > { %v240_v32 = vpop.permute.xlu1 %239 }
 0x201   : > { %v242_v33 = vsel %vm241_vm7, %v240_v32, 0.0 }
 0x202   : > { %v243_v34 = vadd.f32 %v242_v33, %v238_v29 }
 0x204   : > { %244 = vrot.lane.b32.xlu0 %v243_v34, %s573_s8  ;;  %s491_s8 = sshll.u32 %s576_s15, 4  ;;  %s492_s8 = int_to_ptr.vmem [resolvable:$false] %s491_s8 }
 0x205   : > { %s493_s9 = scalar_lea.vmem %s492_s8, 128  ;;  %p494_p1 = scmp.lt.s32.totalorder %s690_s29, %s492_s8 }
 0x206   : > { %p495_p2 = scmp.lt.s32.totalorder %s493_s9, %s487_s7 }
 0x208   : > { %262 = vperm.xlu0 %481, %v259_v35   ;;  %p496_p3 = por %p495_p2, %p494_p1 }
 0x20a   : > { %p497_p5 = pnand %p496_p3, %p490_p0 }
 0x20c   : > { %315 = vperm.xlu0 %481, %v295_v36  }
 0x276   : > { %v245_v37 = vpop.permute.xlu0 %244 }
 0x277   : > { %v247_v38 = vsel %vm246_vm8, %v245_v37, 0.0 }
 0x278   : > { %v248_v39 = vadd.f32 %v247_v38, %v243_v34 }
 0x27a   : > { %249 = vrot.lane.b32.xlu1 %v248_v39, %s574_s11 }
 0x287   : > { %v263_v51 = vpop.permute.xlu0 %262 }
 0x28b   : > { %v316_v12 = vpop.permute.xlu0 %315 }
 0x2ec   : > { %v250_v40 = vpop.permute.xlu1 %249 }
 0x2ed   : > { %v252_v41 = vsel %vm251_vm9, %v250_v40, 0.0 }
 0x2ee   : > { %v253_v42 = vadd.f32 %v252_v41, %v248_v39 }
 0x2f0   : > { %254 = vrot.lane.b32.xlu1 %v253_v42, %s575_s18 }
 0x2f4   : > { %309 = vperm.xlu1 %482, %v294_v43  }
 0x362   : > { %v255_v47 = vpop.permute.xlu1 %254 }
 0x363   : > { %v257_v48 = vsel %vm256_vm10, %v255_v47, 0.0 }
 0x364   : > { %v258_v49 = vadd.f32 %v257_v48, %v253_v42 }
 0x366   : > { %v265_v52 = vadd.f32 %v263_v51, %v258_v49 }
 0x368   : > { %267 = vrot.lane.b32.xlu1 %v265_v52, %s567_s4  ;;  %v278_v53 = vmul.f32 %v484_v50, %v265_v52 }
 0x36a   : > { %v279_v54 = vmul.f32 2.0, %v278_v53  ;;  %v286_v57 = vmul.f32 %v278_v53, %v278_v53  ;;  %v300_v3 = vrot.slane %v278_v53, %v299_v1 }
 0x36c   : > { %v280_v55 = vmul.f32 %v279_v54, %v265_v52  ;;  %v288_v60 = vrot.slane %v286_v57, 7  ;;  %v301_v7 = vsub.f32 %v296_v4, %v300_v3 }
 0x36e   : > { %v282_v56 = vrot.slane %v280_v55, 7 }
 0x370   : > { %v284_v58 = vsub.f32 %v265_v52, %v282_v56 }
 0x372   : > { %v285_v59 = vmul.f32 %v484_v50, %v284_v58 }
 0x373   : > { %v310_v9 = vpop.permute.xlu1 %309 }
 0x374   : > { %v290_v61 = vadd.f32 %v288_v60, %v285_v59 }
 0x376   : > { %v291_v62 = vmax.f32 %v290_v61, 0.0 }
 0x378   : > { %v292_v63 = vadd.f32 1e-08, %v291_v62 }
 0x37a   : > { %485 = vrsqrt.f32 %v292_v63 }
 0x384   : > { %v486_v6 = vpop.eup %485 }
 0x385   : > { %v305_v8 = vrot.slane %v486_v6, %v304_v2 }
 0x387   : > { %v306_v10 = vmul.f32 %v305_v8, %v301_v7 }
 0x389   : > { %v312_v11 = vmul.f32 %v310_v9, %v306_v10 }
 0x38b   : > { %v318_v13 = vadd.f32 %v316_v12, %v312_v11 }
 0x38d   : > { %319 = vst [vmem:[%s183_s28] sm:$0xf] %v318_v13 }
 0x38e   : > { %500 = shalt.err (!%p497_p5)
}
 0x38f   : > { %s501_s10 = scalar_lea.hbm %s688_s6, 64  ;;  %s505_s19 = scalar_lea.hbm %s739_s3, 128 }
 0x390   : > { %p502_p6 = scmp.ne.s32.totalorder %s688_s6, %s501_s10  ;;  %p506_p10 = scmp.lt.u32.totalorder %s688_s6, %s739_s3 }
 0x391   : > { %p507_p11 = scmp.lt.u32.totalorder %s505_s19, %s501_s10  ;;  %p509_p13 = scmp.lt.u32.totalorder %s501_s10, %s688_s6 }
 0x392   : > { %p503_p7 = pnand %p502_p6, %p637_p4 }
 0x393   : > { %p508_p12 = por %p507_p11, %p506_p10 }
 0x394   : > { %p504_p9 = pneg %p503_p7 }
 0x395   : > { %p510_p0 = por %p509_p13, %p508_p12 }
 0x397   : > { %p511_p1 = pnand %p510_p0, %p504_p9 }
 0x399   : > { %514 = shalt.err (!%p511_p1)
}
 0x39a   : > { %417 = dma.vmem_to_hbm [thread:$0]  (%p637_p4), %s690_s29, 64, %s688_s6, %s321_s30  }
 0x3da   : > { %v268_v5 = vpop.permute.xlu1 %267 }
 0x3db   : > { %271 = vst.msk [vmem:[#allocation2] sm:$0x3] %vm195_vm6, %v268_v5 }
 0x3dc PF: > { %p423_p2 = scmp.ge.s32.totalorder %s565_s17, 2  ;;  %s347_s26 = sand.u32 1, %s545_s12  }
 0x3dd   : > { %s348_s27 = scalar_lea.sflag [#allocation4], %s347_s26 }
 0x3de   : > { %p420_p3 = pnand %p423_p2, %p644_p8 }
 0x3e0   : > { %540 = dma.done.wait (!%p420_p3), %s348_s27, 64  }
 0x3e1   : > { %542 = vsyncadd (!%p420_p3), %s348_s27, 4294967232  ;;  %s16_s17 = sadd.s32 1, %s565_s17   ;;  %s742_s12 = smov %s549_s13 }
 0x3e2   : > { %p13_p5 = scmp.ge.s32.totalorder %s16_s17, 4   ;;  %s743_s13 = smov %s553_s14 }
 0x3e3   : > { %s744_s14 = smov %s650_s25  ;;  %s745_s15 = smov %s561_s16 }
 0x3e4   : > { %s746_s16 = smov %s748_s20  ;;  %15 = sbr.rel (!%p13_p5) target bundleno = 4 (0x4), region = 71 }
 0x3eb   :  { %353 = vsyncpa [#allocation4], 1 }
 0x3ec   :  { %355 = vsyncpa [#allocation4 + $0x1], 1 }

</bundles_post_ra>
